<compile_context>
chip_gen: v5e
topology: v5e:2x2
jax: 0.10.0
libtpu: 0.0.40
codegen_flags: <defaults>
</compile_context>

<pallas_src>
import numpy as np
import jax
import jax.numpy as jnp
from jax.experimental import pallas as pl
from jax.experimental.pallas import tpu as pltpu


def _gather_kernel(onehot_ref, x_ref, o_ref):
    # onehot_ref: (R, N) f32 VMEM — constant one-hot selection matrix
    #             (row i is e_{idx[i]}; padded index rows would pick row 0).
    # x_ref:      (N, D) f32 VMEM — entire input table (trivially VMEM-resident).
    # o_ref:      (R, D) f32 VMEM — gathered rows, lane-dense (D multiple of 128).
    #
    # Row gather as one tiny MXU matmul.  precision=HIGHEST keeps the
    # f32-via-bf16 MXU emulation bit-exact for 0/1 multipliers on all chips.
    o_ref[...] = jnp.dot(
        onehot_ref[...],
        x_ref[...],
        precision=jax.lax.Precision.HIGHEST,
        preferred_element_type=jnp.float32,
    ).astype(o_ref.dtype)


def gather_rows(x: jax.Array, index) -> jax.Array:
    """Equivalent of torch `x[index]` for rank-2 x and rank-2 integer index.

    x:     (N, D) float32
    index: (I, J) integer, values in [0, N)  (fixed at module init)
    returns (I, J, D) float32

    Note: like the one-hot formulation, an out-of-range index would produce a
    zero row rather than raising (documented semantic difference vs. torch).
    """
    N, D = x.shape
    index = jnp.asarray(index)
    I, J = index.shape
    R = I * J

    flat_idx = index.reshape(-1).astype(jnp.int32)
    # Fixed index -> this one-hot is a compile-time constant under jit.
    onehot = jax.nn.one_hot(flat_idx, N, dtype=x.dtype)  # (R, N)

    itemsize = jnp.dtype(x.dtype).itemsize
    cost = pl.CostEstimate(
        flops=2 * R * N * D,
        transcendentals=0,
        bytes_accessed=(N * D + R * N + R * D) * itemsize,
    )

    out = pl.pallas_call(
        _gather_kernel,
        out_shape=jax.ShapeDtypeStruct((R, D), x.dtype),
        in_specs=[
            pl.BlockSpec(memory_space=pltpu.MemorySpace.VMEM),  # onehot, whole array
            pl.BlockSpec(memory_space=pltpu.MemorySpace.VMEM),  # x, whole array
        ],
        out_specs=pl.BlockSpec(memory_space=pltpu.MemorySpace.VMEM),
        cost_estimate=cost,
    )(onehot, x)

    return out.reshape(I, J, D)


if __name__ == "__main__":
    key = jax.random.PRNGKey(0)
    k_x, k_idx = jax.random.split(key)

    # Small shapes consistent with the module: rank-2 float32 input with >= 9 rows
    # (index values are in [0, 9)); D = 128 keeps stores lane-dense.
    N, D = 16, 128
    x = jax.random.normal(k_x, (N, D), dtype=jnp.float32)

    # Deterministic stand-in for np.random.randint(0, 9, size=(3, 9)) in __init__.
    index = jax.random.randint(k_idx, (3, 9), minval=0, maxval=9, dtype=jnp.int32)

    y = jax.block_until_ready(gather_rows(x, index))

    # Reference: plain JAX gather (same semantics as torch x[index]).
    y_ref = jnp.take(x, index, axis=0)
    np.testing.assert_allclose(np.asarray(y), np.asarray(y_ref), rtol=0, atol=0)
    assert y.shape == (3, 9, D) and y.dtype == jnp.float32

    print("KERNEL_OK")
</pallas_src>

<mosaic_0001>
module attributes {stable_mosaic.version = 11 : i64} {
  func.func @_gather_kernel(%arg0: memref<27x16xf32, #tpu.memory_space<vmem>>, %arg1: memref<16x128xf32, #tpu.memory_space<vmem>>, %arg2: memref<27x128xf32, #tpu.memory_space<vmem>>) attributes {dimension_semantics = [], scalar_prefetch = 0 : i64, scratch_operands = 0 : i64, tpu.core_type = #tpu.core_type<tc>} {
    %c0 = arith.constant 0 : index
    %c0_0 = arith.constant 0 : index
    %0 = vector.load %arg0[%c0, %c0_0] : memref<27x16xf32, #tpu.memory_space<vmem>>, vector<27x16xf32>
    %c0_1 = arith.constant 0 : index
    %c0_2 = arith.constant 0 : index
    %1 = vector.load %arg1[%c0_1, %c0_2] : memref<16x128xf32, #tpu.memory_space<vmem>>, vector<16x128xf32>
    %cst = arith.constant dense<0.000000e+00> : vector<27x128xf32>
    %2 = tpu.matmul %0, %1, %cst {dimension_numbers = #tpu.dot_dimension_numbers<[1], [0], [0], [1], [0, 0, 1, 1], [], []>, precision = #tpu.contract_precision<fp32>} : vector<27x16xf32>, vector<16x128xf32>, vector<27x128xf32> -> vector<27x128xf32>
    %c0_3 = arith.constant 0 : index
    %c0_4 = arith.constant 0 : index
    %3 = vector.load %arg2[%c0_3, %c0_4] : memref<27x128xf32, #tpu.memory_space<vmem>>, vector<27x128xf32>
    tpu.vector_store %arg2[%c0_3, %c0_4], %2 {strides = array<i32>} : memref<27x128xf32, #tpu.memory_space<vmem>>, vector<27x128xf32>,
    return
  }
}

</mosaic_0001>

<bundles_post_ra>
// kernel: tpu_custom_call.1
= control target key start
LH: loop header
LB: loop body
LE: loop exit
PB: predicated region body
PF: predicated region fallthrough
CT: control target
= control target key end

     0   :  { %vm18_vm0 = vcmask 130048   ;;  %s387_s0 = inlined_call_operand.vmem [shape: f32[27,16], index: 0, kind: input, shape index: {}]   ;;  %s388_s1 = inlined_call_operand.vmem [shape: f32[16,128], index: 1, kind: input, shape index: {}]   ;;  %s389_s2 = inlined_call_operand.hbm [shape: f32[27,128], index: 2, kind: output, shape index: {}]  }
   0x1   :  { %v17_v0 = vld [vmem:[%s388_s1 + $0x8] sm:$0xff]  ;;  %v16_v1 = vld [vmem:[%s388_s1] sm:$0xff]  ;;  %v14_v2 = vld [vmem:[%s387_s0 + $0x10] sm:$0xff] }
   0x2   :  { %v45_v3 = vand.u32 4294901760, %v17_v0  ;;  %v47_v4 = vand.u32 4294901760, %v16_v1  ;;  %v26_v5 = vsel %vm18_vm0, %v14_v2, 0  ;;  %v15_v6 = vld [vmem:[%s387_s0 + $0x18] sm:$0x7]  ;;  %v12_v7 = vld [vmem:[%s387_s0] sm:$0xff] }
   0x3   :  { %v372_v8 = vand.u32 4294901760, %v26_v5  ;;  %v29_v9 = vsel %vm18_vm0, %v15_v6, 0  ;;  %v20_v10 = vsel %vm18_vm0, %v12_v7, 0  ;;  %v13_v11 = vld [vmem:[%s387_s0 + $0x8] sm:$0xff] }
   0x4   :  { %7 = vsyncpa [#allocation3], 0  ;;  %305 = vmatpush.msra.mxu2 %v45_v3  ;;  %v97_v12 = vsub.f32 %v17_v0, %v45_v3  ;;  %v103_v13 = vsub.f32 %v16_v1, %v47_v4  ;;  %46 = vmatpush.msra.mxu0 %v45_v3  ;;  %v73_v14 = vand.u32 4294901760, %v29_v9  ;;  %v49_v15 = vand.u32 4294901760, %v20_v10  ;;  %s338_s0 = smov [#allocation2]   ;;  %s293_s23 = sshll.u32 %s389_s2, 4  ;;  %s294_s23 = int_to_ptr.hbm [resolvable:$true] %s293_s23 }
   0x5   :  { %v66_v16 = vsub.f32 %v26_v5, %v372_v8  ;;  %v23_v17 = vsel %vm18_vm0, %v13_v11, 0  ;;  %s291_s20 = sshll.u32 %s338_s0, 4  ;;  %s339_s24 = smov 128   ;;  %s292_s20 = int_to_ptr.vmem [resolvable:$true] %s291_s20 }
   0x6   :  { %306 = vmatpush.msra.mxu2 %v47_v4  ;;  %v98_v18 = vand.u32 4294901760, %v97_v12  ;;  %v104_v19 = vand.u32 4294901760, %v103_v13  ;;  %v74_v20 = vsub.f32 %v29_v9, %v73_v14  ;;  %48 = vmatpush.msra.mxu0 %v47_v4  ;;  %v50_v21 = vsub.f32 %v20_v10, %v49_v15  ;;  %s340_s25 = smov 8  }
   0x7   :  { %v67_v22 = vand.u32 4294901760, %v66_v16  ;;  %v57_v23 = vand.u32 4294901760, %v23_v17 }
   0x8   :  { %141 = vmatpush.msrb.mxu2 %v97_v12  ;;  %v99_v24 = vsub.f32 %v97_v12, %v98_v18  ;;  %v105_v25 = vsub.f32 %v103_v13, %v104_v19  ;;  %v51_v26 = vand.u32 4294901760, %v50_v21  ;;  %226 = vmatpush.msrb.mxu0 %v98_v18  ;;  %v75_v28 = vand.u32 4294901760, %v74_v20 }
   0x9   :  { %v68_v27 = vsub.f32 %v66_v16, %v67_v22  ;;  %v58_v29 = vsub.f32 %v23_v17, %v57_v23 }
   0xa   :  { %144 = vmatpush.msrb.mxu2 %v103_v13  ;;  %v100_v30 = vand.u32 4294901760, %v99_v24  ;;  %v106_v31 = vand.u32 4294901760, %v105_v25  ;;  %v52_v32 = vsub.f32 %v50_v21, %v51_v26  ;;  %230 = vmatpush.msrb.mxu0 %v104_v19  ;;  %v76_v36 = vsub.f32 %v74_v20, %v75_v28 }
   0xb   :  { %v69_v33 = vand.u32 4294901760, %v68_v27  ;;  %v59_v34 = vand.u32 4294901760, %v58_v29 }
   0xc   :  { %307 = vmatpush.msra.mxu3 %v100_v30  ;;  %101 = vmatpush.msra.mxu1 %v100_v30  ;;  %v53_v35 = vand.u32 4294901760, %v52_v32  ;;  %v77_v38 = vand.u32 4294901760, %v76_v36 }
   0xd   :  { %70 = vmatmul.f32.vlgmr.msra.gmra.mxu2 %v69_v33  ;;  %v60_v37 = vsub.f32 %v58_v29, %v59_v34 }
   0xe   :  { %308 = vmatpush.msra.mxu3 %v106_v31  ;;  %107 = vmatpush.msra.mxu1 %v106_v31 }
   0xf   :  { %117 = vmatmul.f32.vlgmr.msra.gmra.mxu3 %v372_v8  ;;  %54 = vmatmul.f32.vlgmr.msra.gmra.mxu0 %v53_v35  ;;  %v61_v39 = vand.u32 4294901760, %v60_v37 }
  0x10   :  { %181 = vmatpush.msrb.mxu3 %v45_v3  ;;  %109 = vmatmul.f32.vlgmr.msra.gmra.mxu1 %v49_v15 }
  0x11   :  { %263 = vmatpush.msrb.mxu1 %v45_v3 }
  0x12   :  { %183 = vmatpush.msrb.mxu3 %v47_v4 }
  0x13   :  { %265 = vmatpush.msrb.mxu1 %v47_v4 }
  0x15   :  { %78 = vmatmul.f32.gmra.mxu2 %v77_v38 }
  0x17   :  { %121 = vmatmul.f32.gmra.mxu3 %v73_v14  ;;  %62 = vmatmul.f32.gmra.mxu0 %v61_v39 }
  0x18   :  { %113 = vmatmul.f32.gmra.mxu1 %v57_v23 }
  0x1d   :  { %147 = vmatmul.f32.vlgmr.msrb.gmra.mxu2 %v50_v21 }
  0x1f   :  { %187 = vmatmul.f32.vlgmr.msrb.gmra.mxu3 %v51_v26  ;;  %232 = vmatmul.f32.vlgmr.msrb.gmra.mxu0 %v49_v15 }
  0x20   :  { %267 = vmatmul.f32.vlgmr.msrb.gmra.mxu1 %v49_v15 }
  0x25   :  { %152 = vmatmul.f32.gmra.mxu2 %v58_v29 }
  0x27   :  { %193 = vmatmul.f32.gmra.mxu3 %v59_v34  ;;  %236 = vmatmul.f32.gmra.mxu0 %v57_v23 }
  0x28   :  { %271 = vmatmul.f32.gmra.mxu1 %v57_v23 }
  0x2d   :  { %157 = vmatmul.f32.gmra.mxu2 %v66_v16 }
  0x2f   :  { %199 = vmatmul.f32.gmra.mxu3 %v67_v22  ;;  %240 = vmatmul.f32.gmra.mxu0 %v372_v8 }
  0x30   :  { %275 = vmatmul.f32.gmra.mxu1 %v372_v8 }
  0x35   :  { %162 = vmatmul.f32.gmra.mxu2 %v74_v20 }
  0x37   :  { %205 = vmatmul.f32.gmra.mxu3 %v75_v28  ;;  %244 = vmatmul.f32.gmra.mxu0 %v73_v14 }
  0x38   :  { %279 = vmatmul.f32.gmra.mxu1 %v73_v14 }
  0x8c   :  { %v55_v40 = vpop.f32.mrf.mxu0 }
  0x8d   :  { %v110_v41 = vpop.f32.mrf.mxu1 }
  0x8e   :  { %v111_v50 = vadd.f32 %v110_v41, %v55_v40 }
  0x90   :  { %v71_v42 = vpop.f32.mrf.mxu2 }
  0x92   :  { %v118_v43 = vpop.f32.mrf.mxu3 }
  0x93   :  { %v119_v1 = vadd.f32 %v118_v43, %v71_v42 }
  0x94   :  { %v63_v44 = vpop.f32.mrf.mxu0 }
  0x95   :  { %v114_v45 = vpop.f32.mrf.mxu1 }
  0x96   :  { %v115_v57 = vadd.f32 %v114_v45, %v63_v44 }
  0x98   :  { %v79_v46 = vpop.f32.mrf.mxu2 }
  0x9a   :  { %v122_v47 = vpop.f32.mrf.mxu3 }
  0x9b   :  { %v123_v10 = vadd.f32 %v122_v47, %v79_v46 }
  0x9c   :  { %v233_v48 = vpop.f32.mrf.mxu0 }
  0x9d   :  { %v268_v49 = vpop.f32.mrf.mxu1 }
  0xa0   :  { %v148_v51 = vpop.f32.mrf.mxu2 }
  0xa1   :  { %v149_v52 = vadd.f32 %v148_v51, %v111_v50 }
  0xa2   :  { %v188_v53 = vpop.f32.mrf.mxu3 }
  0xa3   :  { %v189_v54 = vadd.f32 %v188_v53, %v149_v52 }
  0xa4   :  { %v237_v56 = vpop.f32.mrf.mxu0 }
  0xa5   :  { %v234_v55 = vadd.f32 %v233_v48, %v189_v54  ;;  %v272_v60 = vpop.f32.mrf.mxu1 }
  0xa7   :  { %v269_v58 = vadd.f32 %v268_v49, %v234_v55 }
  0xa8   :  { %v153_v59 = vpop.f32.mrf.mxu2 }
  0xa9   :  { %283 = vst [vmem:[#allocation2] sm:$0xff] %v269_v58  ;;  %v154_v61 = vadd.f32 %v153_v59, %v115_v57 }
  0xaa   :  { %v194_v62 = vpop.f32.mrf.mxu3 }
  0xab   :  { %v195_v63 = vadd.f32 %v194_v62, %v154_v61 }
  0xac   :  { %v241_v4 = vpop.f32.mrf.mxu0 }
  0xad   :  { %v238_v0 = vadd.f32 %v237_v56, %v195_v63  ;;  %v276_v7 = vpop.f32.mrf.mxu1 }
  0xaf   :  { %v273_v2 = vadd.f32 %v272_v60, %v238_v0 }
  0xb0   :  { %v158_v3 = vpop.f32.mrf.mxu2 }
  0xb1   :  { %284 = vst [vmem:[#allocation2 + $0x8] sm:$0xff] %v273_v2  ;;  %v159_v5 = vadd.f32 %v158_v3, %v119_v1 }
  0xb2   :  { %v200_v6 = vpop.f32.mrf.mxu3 }
  0xb3   :  { %v201_v8 = vadd.f32 %v200_v6, %v159_v5 }
  0xb4   :  { %v245_v15 = vpop.f32.mrf.mxu0 }
  0xb5   :  { %v242_v9 = vadd.f32 %v241_v4, %v201_v8  ;;  %v280_v17 = vpop.f32.mrf.mxu1 }
  0xb7   :  { %v277_v11 = vadd.f32 %v276_v7, %v242_v9 }
  0xb8   :  { %v163_v12 = vpop.f32.mrf.mxu2 }
  0xb9   :  { %285 = vst [vmem:[#allocation2 + $0x10] sm:$0xff] %v277_v11  ;;  %v164_v13 = vadd.f32 %v163_v12, %v123_v10 }
  0xba   :  { %v206_v14 = vpop.f32.mrf.mxu3 }
  0xbb   :  { %v207_v16 = vadd.f32 %v206_v14, %v164_v13 }
  0xbd   :  { %v246_v18 = vadd.f32 %v245_v15, %v207_v16 }
  0xbf   :  { %v281_v19 = vadd.f32 %v280_v17, %v246_v18 }
  0xc1   :  { %286 = vst [vmem:[#allocation2 + $0x18] sm:$0x7] %v281_v19 }
  0xc2   :  { %299 = dma.vmem_to_hbm [thread:$0]  %s292_s20, 512, %s294_s23, [#allocation3], %s339_s24, %s339_s24, %s340_s25  }
  0xc3   :  { %336 = dma.done.wait [#allocation3], 512  }
  0xc4   :  { %337 = vsyncadd [#allocation3], 4294966784 }
  0xc5   :  { %304 = vsyncpa [#allocation3], 1 }

</bundles_post_ra>
